<compile_context>
chip_gen: v6e
topology: v6e:2x2x1
jax: 0.10.0
libtpu: 0.0.40
codegen_flags: <defaults>
</compile_context>

<pallas_src>
import jax
import jax.numpy as jnp
from jax.experimental import pallas as pl
from jax.experimental.pallas import tpu as pltpu


def _round_up(x, m):
    return ((x + m - 1) // m) * m


def actor_kernel(x_ref, w1_ref, b1_ref, w2_ref, b2_ref, w3_ref, b3_ref, o_ref):
    # Fused 3-layer MLP on one batch tile: MXU matmuls with f32 accumulation,
    # VPU relu / bias adds, EUP tanh. Activations are cast to the weight dtype
    # before each dot so an optional bf16 weight layout is single-pass on the MXU.
    x = x_ref[...]
    h = jnp.dot(x.astype(w1_ref.dtype), w1_ref[...],
                preferred_element_type=jnp.float32) + b1_ref[...]
    h = jnp.maximum(h, 0.0)
    h = jnp.dot(h.astype(w2_ref.dtype), w2_ref[...],
                preferred_element_type=jnp.float32) + b2_ref[...]
    h = jnp.maximum(h, 0.0)
    h = jnp.dot(h.astype(w3_ref.dtype), w3_ref[...],
                preferred_element_type=jnp.float32) + b3_ref[...]
    o_ref[...] = jnp.tanh(h).astype(o_ref.dtype)


def _pick_batch_tile(B):
    # Single grid step up to 1024 rows: this kernel is launch/HBM-overhead bound and
    # v5e/v6e have one TensorCore, so extra grid steps are pure per-step overhead.
    if B <= 1024:
        return B
    # Large batches: 512-row tiles sit near the HBM roofline and naturally give >=2
    # grid steps so a v7x megacore can shard the "parallel" batch axis across its TCs.
    return 512


def actor_forward(x, params, *, batch_tile=None):
    """x: (B, input_size) float32.

    params: dict with w1/w2/w3 in (in_dim, out_dim) layout (PyTorch nn.Linear weight
    transposed) and b1/b2/b3 with shape (1, out_dim). Weights may be f32 or bf16
    (see prepare_actor_params); biases stay f32.
    """
    B, in_dim = x.shape
    w1, b1, w2, b2, w3, b3 = (params[k] for k in ("w1", "b1", "w2", "b2", "w3", "b3"))
    hid = w1.shape[1]
    out_dim = w3.shape[1]

    if batch_tile is None:
        batch_tile = _pick_batch_tile(B)

    if batch_tile >= B:
        # One full-extent block along the batch axis: no (8,128) constraint, no padding.
        batch_tile = B
        B_pad = B
    else:
        # Multi-tile path: tile must be sublane-aligned and divide the (padded) batch.
        batch_tile = max(8, (batch_tile // 8) * 8)
        B_pad = _round_up(B, batch_tile)

    grid = (B_pad // batch_tile,)
    x_in = x if B_pad == B else jnp.pad(x, ((0, B_pad - B), (0, 0)))

    def nbytes(a):
        return a.size * a.dtype.itemsize

    cost = pl.CostEstimate(
        flops=2 * B_pad * (in_dim * hid + hid * hid + hid * out_dim),
        transcendentals=B_pad * out_dim,  # tanh
        bytes_accessed=(B_pad * in_dim * x.dtype.itemsize
                        + B_pad * out_dim * 4
                        + sum(nbytes(p) for p in (w1, b1, w2, b2, w3, b3))),
    )

    const = lambda shape: pl.BlockSpec(shape, lambda i: (0, 0))

    out_p = pl.pallas_call(
        actor_kernel,
        out_shape=jax.ShapeDtypeStruct((B_pad, out_dim), jnp.float32),
        grid_spec=pltpu.PrefetchScalarGridSpec(
            num_scalar_prefetch=0,
            grid=grid,
            in_specs=[
                pl.BlockSpec((batch_tile, in_dim), lambda i: (i, 0)),
                const((in_dim, hid)), const((1, hid)),
                const((hid, hid)), const((1, hid)),
                const((hid, out_dim)), const((1, out_dim)),
            ],
            out_specs=pl.BlockSpec((batch_tile, out_dim), lambda i: (i, 0)),
        ),
        compiler_params=pltpu.CompilerParams(
            dimension_semantics=("parallel",),
        ),
        cost_estimate=cost,
    )(x_in, w1, b1, w2, b2, w3, b3)

    return out_p if B_pad == B else out_p[:B]


def init_actor_params(key, input_size, output_size, hidden=64):
    """Deterministic init mimicking nn.Linear default (uniform(+-1/sqrt(fan_in)))."""
    ks = jax.random.split(key, 6)

    def lin(kw, kb, fan_in, fan_out):
        bound = 1.0 / jnp.sqrt(fan_in)
        w = jax.random.uniform(kw, (fan_in, fan_out), jnp.float32, -bound, bound)
        b = jax.random.uniform(kb, (1, fan_out), jnp.float32, -bound, bound)
        return w, b

    w1, b1 = lin(ks[0], ks[1], input_size, hidden)
    w2, b2 = lin(ks[2], ks[3], hidden, hidden)
    w3, b3 = lin(ks[4], ks[5], hidden, output_size)
    return {"w1": w1, "b1": b1, "w2": w2, "b2": b2, "w3": w3, "b3": b3}


def prepare_actor_params(params, weight_dtype=jnp.float32):
    """One-time parameter prep (call at init, NOT per forward): optional bf16 weight
    cast for the bf16-native v6e/v7x MXU. Biases stay f32 (added after f32 accumulation)."""
    out = dict(params)
    for k in ("w1", "w2", "w3"):
        out[k] = params[k].astype(weight_dtype)
    return out


def actor_reference(x, p):
    h1 = jnp.maximum(x @ p["w1"] + p["b1"], 0.0)
    h2 = jnp.maximum(h1 @ p["w2"] + p["b2"], 0.0)
    return jnp.tanh(h2 @ p["w3"] + p["b3"])


if __name__ == "__main__":
    key = jax.random.PRNGKey(0)
    k_x, k_p, k_x2 = jax.random.split(key, 3)

    input_size = 16   # e.g. robot state dim
    output_size = 4   # e.g. action dim
    params = init_actor_params(k_p, input_size, output_size)

    # 1) Small batch, f32 params, single full-extent tile (no padding anywhere).
    x = jax.random.normal(k_x, (8, input_size), jnp.float32)
    out = jax.block_until_ready(actor_forward(x, params))
    ref = actor_reference(x, params)
    assert out.shape == (8, output_size)
    assert jnp.allclose(out, ref, atol=2e-5, rtol=2e-5), "mismatch vs JAX reference (B=8)"

    # 2) Multi-tile path: forced small tile so the grid has >1 step and the batch is
    #    padded/sliced (exercises the "parallel" batch axis + last-tile padding drop).
    x2 = jax.random.normal(k_x2, (40, input_size), jnp.float32)
    out2 = jax.block_until_ready(actor_forward(x2, params, batch_tile=16))
    ref2 = actor_reference(x2, params)
    assert out2.shape == (40, output_size)
    assert jnp.allclose(out2, ref2, atol=2e-5, rtol=2e-5), "mismatch vs JAX reference (B=40)"

    # 3) bf16 weights (v6e/v7x MXU-friendly layout), loosened tolerance vs f32 reference.
    params_bf16 = prepare_actor_params(params, jnp.bfloat16)
    out3 = jax.block_until_ready(actor_forward(x2, params_bf16))
    assert out3.shape == (40, output_size)
    assert jnp.allclose(out3, ref2, atol=5e-2, rtol=5e-2), "mismatch vs reference (bf16 weights)"

    print("KERNEL_OK")
</pallas_src>

<mosaic_0001>
module attributes {stable_mosaic.version = 11 : i64} {
  func.func @actor_kernel(%arg0: i32, %arg1: memref<8x16xf32, #tpu.memory_space<vmem>>, %arg2: memref<16x64xf32, #tpu.memory_space<vmem>>, %arg3: memref<1x64xf32, #tpu.memory_space<vmem>>, %arg4: memref<64x64xf32, #tpu.memory_space<vmem>>, %arg5: memref<1x64xf32, #tpu.memory_space<vmem>>, %arg6: memref<64x4xf32, #tpu.memory_space<vmem>>, %arg7: memref<1x4xf32, #tpu.memory_space<vmem>>, %arg8: memref<8x4xf32, #tpu.memory_space<vmem>>) attributes {dimension_semantics = [#tpu.dimension_semantics<parallel>], iteration_bounds = array<i64: 1>, scalar_prefetch = 0 : i64, scratch_operands = 0 : i64, tpu.core_type = #tpu.core_type<tc>, window_params = [{transform_indices = @transform_0, window_bounds = array<i64: 8, 16>}, {pipeline_mode = #tpu.pipeline_mode<synchronous>, transform_indices = @transform_1, window_bounds = array<i64: 16, 64>}, {pipeline_mode = #tpu.pipeline_mode<synchronous>, transform_indices = @transform_2, window_bounds = array<i64: 1, 64>}, {pipeline_mode = #tpu.pipeline_mode<synchronous>, transform_indices = @transform_3, window_bounds = array<i64: 64, 64>}, {pipeline_mode = #tpu.pipeline_mode<synchronous>, transform_indices = @transform_4, window_bounds = array<i64: 1, 64>}, {pipeline_mode = #tpu.pipeline_mode<synchronous>, transform_indices = @transform_5, window_bounds = array<i64: 64, 4>}, {pipeline_mode = #tpu.pipeline_mode<synchronous>, transform_indices = @transform_6, window_bounds = array<i64: 1, 4>}, {transform_indices = @transform_7, window_bounds = array<i64: 8, 4>}]} {
    %c0 = arith.constant 0 : index
    %c0_0 = arith.constant 0 : index
    %0 = vector.load %arg1[%c0, %c0_0] : memref<8x16xf32, #tpu.memory_space<vmem>>, vector<8x16xf32>
    %c0_1 = arith.constant 0 : index
    %c0_2 = arith.constant 0 : index
    %1 = vector.load %arg2[%c0_1, %c0_2] : memref<16x64xf32, #tpu.memory_space<vmem>>, vector<16x64xf32>
    %cst = arith.constant dense<0.000000e+00> : vector<8x64xf32>
    %2 = tpu.matmul %0, %1, %cst {dimension_numbers = #tpu.dot_dimension_numbers<[1], [0], [0], [1], [0, 0, 1, 1], [], []>} : vector<8x16xf32>, vector<16x64xf32>, vector<8x64xf32> -> vector<8x64xf32>
    %c0_3 = arith.constant 0 : index
    %c0_4 = arith.constant 0 : index
    %3 = vector.load %arg3[%c0_3, %c0_4] : memref<1x64xf32, #tpu.memory_space<vmem>>, vector<1x64xf32>
    %4 = vector.broadcast %3 : vector<1x64xf32> to vector<8x64xf32>
    %5 = arith.addf %2, %4 : vector<8x64xf32>
    %cst_5 = arith.constant 0.000000e+00 : f32
    %6 = vector.broadcast %cst_5 : f32 to vector<8x64xf32>
    %7 = arith.maximumf %5, %6 : vector<8x64xf32>
    %c0_6 = arith.constant 0 : index
    %c0_7 = arith.constant 0 : index
    %8 = vector.load %arg4[%c0_6, %c0_7] : memref<64x64xf32, #tpu.memory_space<vmem>>, vector<64x64xf32>
    %cst_8 = arith.constant dense<0.000000e+00> : vector<8x64xf32>
    %9 = tpu.matmul %7, %8, %cst_8 {dimension_numbers = #tpu.dot_dimension_numbers<[1], [0], [0], [1], [0, 0, 1, 1], [], []>} : vector<8x64xf32>, vector<64x64xf32>, vector<8x64xf32> -> vector<8x64xf32>
    %c0_9 = arith.constant 0 : index
    %c0_10 = arith.constant 0 : index
    %10 = vector.load %arg5[%c0_9, %c0_10] : memref<1x64xf32, #tpu.memory_space<vmem>>, vector<1x64xf32>
    %11 = vector.broadcast %10 : vector<1x64xf32> to vector<8x64xf32>
    %12 = arith.addf %9, %11 : vector<8x64xf32>
    %cst_11 = arith.constant 0.000000e+00 : f32
    %13 = vector.broadcast %cst_11 : f32 to vector<8x64xf32>
    %14 = arith.maximumf %12, %13 : vector<8x64xf32>
    %c0_12 = arith.constant 0 : index
    %c0_13 = arith.constant 0 : index
    %15 = vector.load %arg6[%c0_12, %c0_13] : memref<64x4xf32, #tpu.memory_space<vmem>>, vector<64x4xf32>
    %cst_14 = arith.constant dense<0.000000e+00> : vector<8x4xf32>
    %16 = tpu.matmul %14, %15, %cst_14 {dimension_numbers = #tpu.dot_dimension_numbers<[1], [0], [0], [1], [0, 0, 1, 1], [], []>} : vector<8x64xf32>, vector<64x4xf32>, vector<8x4xf32> -> vector<8x4xf32>
    %c0_15 = arith.constant 0 : index
    %c0_16 = arith.constant 0 : index
    %17 = vector.load %arg7[%c0_15, %c0_16] : memref<1x4xf32, #tpu.memory_space<vmem>>, vector<1x4xf32>
    %18 = vector.broadcast %17 : vector<1x4xf32> to vector<8x4xf32>
    %19 = arith.addf %16, %18 : vector<8x4xf32>
    %20 = math.tanh %19 : vector<8x4xf32>
    %c0_17 = arith.constant 0 : index
    %c0_18 = arith.constant 0 : index
    %21 = vector.load %arg8[%c0_17, %c0_18] : memref<8x4xf32, #tpu.memory_space<vmem>>, vector<8x4xf32>
    tpu.vector_store %arg8[%c0_17, %c0_18], %20 {strides = array<i32>} : memref<8x4xf32, #tpu.memory_space<vmem>>, vector<8x4xf32>,
    return
  }
  func.func @transform_0(%arg0: i32) -> (i32, i32) {
    %c0_i32 = arith.constant 0 : i32
    %c0_i32_0 = arith.constant 0 : i32
    return %arg0, %c0_i32 : i32, i32
  }
  func.func @transform_1(%arg0: i32) -> (i32, i32) {
    %c0_i32 = arith.constant 0 : i32
    %c0_i32_0 = arith.constant 0 : i32
    %c0_i32_1 = arith.constant 0 : i32
    return %c0_i32, %c0_i32_0 : i32, i32
  }
  func.func @transform_2(%arg0: i32) -> (i32, i32) {
    %c0_i32 = arith.constant 0 : i32
    %c0_i32_0 = arith.constant 0 : i32
    %c0_i32_1 = arith.constant 0 : i32
    return %c0_i32, %c0_i32_0 : i32, i32
  }
  func.func @transform_3(%arg0: i32) -> (i32, i32) {
    %c0_i32 = arith.constant 0 : i32
    %c0_i32_0 = arith.constant 0 : i32
    %c0_i32_1 = arith.constant 0 : i32
    return %c0_i32, %c0_i32_0 : i32, i32
  }
  func.func @transform_4(%arg0: i32) -> (i32, i32) {
    %c0_i32 = arith.constant 0 : i32
    %c0_i32_0 = arith.constant 0 : i32
    %c0_i32_1 = arith.constant 0 : i32
    return %c0_i32, %c0_i32_0 : i32, i32
  }
  func.func @transform_5(%arg0: i32) -> (i32, i32) {
    %c0_i32 = arith.constant 0 : i32
    %c0_i32_0 = arith.constant 0 : i32
    %c0_i32_1 = arith.constant 0 : i32
    return %c0_i32, %c0_i32_0 : i32, i32
  }
  func.func @transform_6(%arg0: i32) -> (i32, i32) {
    %c0_i32 = arith.constant 0 : i32
    %c0_i32_0 = arith.constant 0 : i32
    %c0_i32_1 = arith.constant 0 : i32
    return %c0_i32, %c0_i32_0 : i32, i32
  }
  func.func @transform_7(%arg0: i32) -> (i32, i32) {
    %c0_i32 = arith.constant 0 : i32
    %c0_i32_0 = arith.constant 0 : i32
    return %arg0, %c0_i32 : i32, i32
  }
}

</mosaic_0001>

<bundles_post_ra>
// kernel: tpu_custom_call.1
= control target key start
LH: loop header
LB: loop body
LE: loop exit
PB: predicated region body
PF: predicated region fallthrough
CT: control target
= control target key end

     0   :  { %12 = vsyncpa [#allocation3], 0  ;;  %s586_s0 = inlined_call_operand.vmem [shape: f32[8,16], index: 0, kind: input, shape index: {}]   ;;  %s587_s1 = inlined_call_operand.hbm [shape: f32[16,64], index: 1, kind: input, shape index: {}]   ;;  %s588_s2 = inlined_call_operand.vmem [shape: f32[1,64], index: 2, kind: input, shape index: {}]   ;;  %s589_s3 = inlined_call_operand.vmem [shape: f32[64,64], index: 3, kind: input, shape index: {}]   ;;  %s590_s4 = inlined_call_operand.hbm [shape: f32[1,64], index: 4, kind: input, shape index: {}]   ;;  %s591_s5 = inlined_call_operand.vmem [shape: f32[64,4], index: 5, kind: input, shape index: {}]   ;;  %s592_s6 = inlined_call_operand.vmem [shape: f32[1,4], index: 6, kind: input, shape index: {}]   ;;  %s593_s7 = inlined_call_operand.vmem [shape: f32[8,4], index: 7, kind: output, shape index: {}]  }
   0x1   :  { %13 = vsyncpa [#allocation5], 0  ;;  %s448_s24 = smov [#allocation2]  }
   0x2   :  { %s21_s25 = sshll.u32 %s448_s24, 4  ;;  %s22_s25 = int_to_ptr.vmem [resolvable:$true] %s21_s25 }
   0x3   :  { %s412_s26 = scalar_lea.vmem %s22_s25, 256  ;;  %p417_p1 = scmp.lt.s32.totalorder %s22_s25, %s22_s25 }
   0x4   :  { %p413_p0 = scmp.ne.s32.totalorder %s22_s25, %s412_s26  ;;  %p418_p2 = scmp.lt.s32.totalorder %s412_s26, %s412_s26 }
   0x6   :  { %p419_p3 = por %p418_p2, %p417_p1 }
   0x8   :  { %p420_p4 = pnand %p419_p3, %p413_p0 }
   0xa   :  { %423 = shalt.err (!%p420_p4)
}
   0xb   :  { %s449_s27 = smov 128   ;;  %s450_s28 = smov 8  }
   0xc   :  { %27 = dma.hbm_to_vmem [thread:$0]  %s587_s1, 256, %s22_s25, [#allocation3], %s449_s27, %s449_s27, %s450_s28  }
   0xd   :  { %s451_s8 = smov [#allocation4]  }
   0xe   :  { %s38_s9 = sshll.u32 %s451_s8, 4  ;;  %s39_s9 = int_to_ptr.vmem [resolvable:$true] %s38_s9 }
   0xf   :  { %s432_s10 = scalar_lea.vmem %s39_s9, 16  ;;  %s436_s11 = scalar_lea.vmem %s39_s9, 32 }
  0x10   :  { %p433_p5 = scmp.ne.s32.totalorder %s39_s9, %s432_s10  ;;  %p437_p6 = scmp.lt.s32.totalorder %s39_s9, %s39_s9 }
  0x11   :  { %p438_p7 = scmp.lt.s32.totalorder %s436_s11, %s432_s10 }
  0x13   :  { %p439_p8 = por %p438_p7, %p437_p6 }
  0x15   :  { %p440_p9 = pnand %p439_p8, %p433_p5 }
  0x17   :  { %443 = shalt.err (!%p440_p9)
}
  0x18   :  { %41 = dma.hbm_to_vmem [thread:$0]  %s590_s4, 16, %s39_s9, [#allocation5]  }
  0x19   :  { %444 = dma.done.wait [#allocation3], 256  }
  0x1a   :  { %445 = vsyncadd [#allocation3], 4294967040 }
  0x1b   :  { %446 = dma.done.wait [#allocation5], 16  }
  0x1c   :  { %447 = vsyncadd [#allocation5], 4294967280  ;;  %v452_v0 = vmov 0.0   ;;  %vm453_vm0 = vmmov 0   ;;  %v54_v1 = vld [vmem:[#allocation2 + $0x8] sm:$0xff]  ;;  %v53_v2 = vld [vmem:[#allocation2] sm:$0xff] }
  0x1d   :  { %351 = vmatprep.subr.mxu0 %v452_v0  ;;  %355 = vmatprep.mubr.msk.f32.mxu0 %vm453_vm0, %v452_v0  ;;  %v52_v3 = vld [vmem:[%s586_s0] sm:$0xff]  ;;  %vm62_vm1 = vcmask 130048   ;;  %v144_v4 = vld [vmem:[%s589_s3 + $0x38] sm:$0xff]  ;;  %v143_v5 = vld [vmem:[%s589_s3 + $0x30] sm:$0xff]  ;;  %vm152_vm2 = vcmask 523264   ;;  %vm316_vm3 = vcmask 31744  }
  0x1e   :  { %358 = vmatprep.subr.mxu1 %v452_v0  ;;  %374 = vmatprep.mubr.msk.f32.mxu1 %vm453_vm0, %v452_v0  ;;  %v142_v6 = vld [vmem:[%s589_s3 + $0x28] sm:$0xff]  ;;  %v141_v7 = vld [vmem:[%s589_s3 + $0x20] sm:$0xff]  ;;  %v140_v8 = vld [vmem:[%s589_s3 + $0x18] sm:$0xff] }
  0x1f   :  { %352 = vmatpush3.msra.mxu0 %v54_v1  ;;  %359 = vmatpush3.msra.mxu1 %v144_v4  ;;  %v139_v9 = vld [vmem:[%s589_s3 + $0x10] sm:$0xff]  ;;  %v138_v10 = vld [vmem:[%s589_s3 + $0x8] sm:$0xff]  ;;  %v137_v11 = vld [vmem:[%s589_s3] sm:$0xff] }
  0x20   :  { %353 = vmatprep.subr.mxu0 %v452_v0  ;;  %360 = vmatprep.subr.mxu1 %v452_v0  ;;  %v234_v12 = vld [vmem:[%s591_s5 + $0x38] sm:$0xff]  ;;  %v233_v13 = vld [vmem:[%s591_s5 + $0x30] sm:$0xff]  ;;  %v232_v14 = vld [vmem:[%s591_s5 + $0x28] sm:$0xff] }
  0x21   :  { %354 = vmatpush3.msra.mxu0 %v53_v2  ;;  %361 = vmatpush3.msra.mxu1 %v143_v5  ;;  %v231_v15 = vld [vmem:[%s591_s5 + $0x20] sm:$0xff]  ;;  %v230_v16 = vld [vmem:[%s591_s5 + $0x18] sm:$0xff]  ;;  %v229_v22 = vld [vmem:[%s591_s5 + $0x10] sm:$0xff] }
  0x22   :  { %356 = vmatmul.mubr.msk.f32.vlgmr.msra.gmra.mxu0 %vm62_vm1, %v52_v3  ;;  %362 = vmatprep.subr.mxu1 %v452_v0  ;;  %v324_v17 = vld [vmem:[%s588_s2] ss:$0 sm:$0xff]  ;;  %v228_v23 = vld [vmem:[%s591_s5 + $0x8] sm:$0xff]  ;;  %v326_v25 = vld [vmem:[#allocation4] ss:$0 sm:$0xff] }
  0x23   :  { %377 = vmatprep.subr.mxu0 %v452_v0  ;;  %363 = vmatpush3.msra.mxu1 %v142_v6  ;;  %v227_v24 = vld [vmem:[%s591_s5] sm:$0xff] }
  0x24   :  { %393 = vmatprep.mubr.msk.f32.mxu0 %vm453_vm0, %v452_v0  ;;  %364 = vmatprep.subr.mxu1 %v452_v0  ;;  %v328_v30 = vld [vmem:[%s592_s6] ss:$0 sm:$0xff] }
  0x25   :  { %365 = vmatpush3.msra.mxu1 %v141_v7  ;;  %378 = vmatpush3.msra.mxu0 %v234_v12 }
  0x26   :  { %366 = vmatprep.subr.mxu1 %v452_v0  ;;  %379 = vmatprep.subr.mxu0 %v452_v0 }
  0x27   :  { %367 = vmatpush3.msra.mxu1 %v140_v8  ;;  %380 = vmatpush3.msra.mxu0 %v233_v13 }
  0x28   :  { %368 = vmatprep.subr.mxu1 %v452_v0  ;;  %381 = vmatprep.subr.mxu0 %v452_v0 }
  0x29   :  { %369 = vmatpush3.msra.mxu1 %v139_v9  ;;  %382 = vmatpush3.msra.mxu0 %v232_v14 }
  0x2a   :  { %370 = vmatprep.subr.mxu1 %v452_v0  ;;  %383 = vmatprep.subr.mxu0 %v452_v0 }
  0x2b   :  { %371 = vmatpush3.msra.mxu1 %v138_v10  ;;  %384 = vmatpush3.msra.mxu0 %v231_v15 }
  0x2c   :  { %372 = vmatprep.subr.mxu1 %v452_v0  ;;  %385 = vmatprep.subr.mxu0 %v452_v0 }
  0x2d   :  { %373 = vmatpush3.msra.mxu1 %v137_v11  ;;  %386 = vmatpush3.msra.mxu0 %v230_v16 }
  0x2e   :  { %387 = vmatprep.subr.mxu0 %v452_v0 }
  0x2f   :  { %388 = vmatpush3.msra.mxu0 %v229_v22 }
  0x30   :  { %389 = vmatprep.subr.mxu0 %v452_v0 }
  0x31   :  { %390 = vmatpush3.msra.mxu0 %v228_v23 }
  0x32   :  { %391 = vmatprep.subr.mxu0 %v452_v0 }
  0x33   :  { %392 = vmatpush3.msra.mxu0 %v227_v24 }
  0xe2   :  { %v132_v18 = vpop.f32.mrf.mxu0 }
  0xe3   :  { %v133_v19 = vadd.f32 %v324_v17, %v132_v18 }
  0xe4   :  { %v357_v20 = vpop.f32.mrf.mxu0 }
  0xe5   :  { %v136_v21 = vmax.f32 %v133_v19, 0.0 }
  0xe7   :  { %375 = vmatmul.mubr.msk.f32.vlgmr.msra.gmra.mxu1 %vm152_vm2, %v136_v21 }
 0x1a7   :  { %v222_v26 = vpop.f32.mrf.mxu1 }
 0x1a8   :  { %v223_v27 = vadd.f32 %v326_v25, %v222_v26 }
 0x1a9   :  { %v376_v28 = vpop.f32.mrf.mxu1 }
 0x1aa   :  { %v226_v29 = vmax.f32 %v223_v27, 0.0 }
 0x1ac   :  { %394 = vmatmul.mubr.msk.f32.vlgmr.msra.gmra.mxu0 %vm152_vm2, %v226_v29 }
 0x26c   :  { %v311_v31 = vpop.f32.mrf.mxu0 }
 0x26d   :  { %v312_v32 = vadd.f32 %v328_v30, %v311_v31 }
 0x26e   :  { %v395_v33 = vpop.f32.mrf.mxu0 }
 0x26f   :  { %402 = vtanh.f32 %v312_v32 }
 0x27c   :  { %v403_v34 = vpop.eup %402 }
 0x27d   :  { %317 = vst.msk [vmem:[%s593_s7] sm:$0xff] %vm316_vm3, %v403_v34 }
 0x27e   :  { %322 = vsyncpa [#allocation3], 1 }
 0x27f   :  { %323 = vsyncpa [#allocation5], 1 }

</bundles_post_ra>
